<compile_context>
chip_gen: v7x
topology: tpu7x:2x2x1
jax: 0.10.0
libtpu: 0.0.40
codegen_flags: <defaults>
</compile_context>

<pallas_src>
import functools

import jax
import jax.numpy as jnp
from jax import lax
from jax.experimental import pallas as pl
from jax.experimental.pallas import tpu as pltpu

SCALE = 0.7071067811865476  # sqrt(0.5), matches torch.sqrt(FloatTensor([0.5]))


def _round_up(x, m):
    return ((x + m - 1) // m) * m


def _encoder_kernel(emb_ref, w_e2h_ref, b_e2h_ref,
                    conv_wa_ref, conv_wg_ref, conv_ba_ref, conv_bg_ref,
                    w_h2e_ref, b_h2e_ref, out_ref, xpad_ref,
                    *, n_layers, kernel_size, batch, seq_len, hid_dim, emb_dim,
                    use_bf16):
    """Fused encoder: emb2hid -> [im2col conv + GLU + residual]*N -> hid2emb."""
    pad = (kernel_size - 1) // 2
    bl = batch * seq_len

    def mm(a, b):
        # bf16 on the MXU, f32 accumulation; elementwise math stays f32.
        if use_bf16:
            a = a.astype(jnp.bfloat16)
            b = b.astype(jnp.bfloat16)
        return jnp.dot(a, b, preferred_element_type=jnp.float32)

    embedded = emb_ref[...]                                     # (BL, E) f32

    # emb2hid
    x = mm(embedded, w_e2h_ref[...]) + b_e2h_ref[...]           # (BL, H) f32

    # Zero the padded scratch once; halo rows stay zero for all layers.
    xpad_ref[...] = jnp.zeros(xpad_ref.shape, xpad_ref.dtype)

    # Static Python loop: n_layers / kernel_size are compile-time constants.
    for layer in range(n_layers):
        # Write current activations into the interior of the padded scratch.
        xpad_ref[:, pl.ds(pad, seq_len), :] = x.reshape(batch, seq_len, hid_dim)
        # im2col: K shifted views concatenated along channels -> (BL, K*H).
        cols = [xpad_ref[:, pl.ds(k, seq_len), :] for k in range(kernel_size)]
        xcat = jnp.concatenate(cols, axis=-1).reshape(bl, kernel_size * hid_dim)
        # GLU halves as two separate matmuls (no mid-lane split of a 2H block).
        a = mm(xcat, conv_wa_ref[layer]) + conv_ba_ref[layer]   # (BL, H)
        g = mm(xcat, conv_wg_ref[layer]) + conv_bg_ref[layer]   # (BL, H)
        conved = a * jax.nn.sigmoid(g)                          # GLU
        x = (conved + x) * SCALE                                # residual + scale

    # hid2emb
    conved_e = mm(x, w_h2e_ref[...]) + b_h2e_ref[...]           # (BL, E)
    combined = (conved_e + embedded) * SCALE                    # (BL, E)

    # Lane-dense single output block: pad channel dim up to a 128 multiple.
    e_out = out_ref.shape[-1]
    if e_out > emb_dim:
        z = jnp.zeros((bl, e_out - emb_dim), jnp.float32)
        conved_e = jnp.concatenate([conved_e, z], axis=-1)
        combined = jnp.concatenate([combined, z], axis=-1)
    out_ref[0] = conved_e.astype(out_ref.dtype)
    out_ref[1] = combined.astype(out_ref.dtype)


def encoder_pallas(src, params, *, n_layers, kernel_size, use_bf16=True):
    """Encoder forward.  src: int32 (B, L).  Returns (conved, combined), each (B, L, E)."""
    assert kernel_size % 2 == 1, "Kernel size should be odd in encoder"
    tok_emb, pos_emb = params["tok_emb"], params["pos_emb"]      # (V,E), (max_len,E)
    w_e2h, b_e2h = params["w_e2h"], params["b_e2h"]              # (E,H), (1,H)
    conv_w, conv_b = params["conv_w"], params["conv_b"]          # (NL,K,H,2H), (NL,1,2H)
    w_h2e, b_h2e = params["w_h2e"], params["b_h2e"]              # (H,E), (1,E)

    B, L = src.shape
    E = tok_emb.shape[1]
    H = w_e2h.shape[1]
    NL, K = conv_w.shape[0], conv_w.shape[1]
    BL = B * L
    pad = (kernel_size - 1) // 2
    E_out = _round_up(E, 128)

    # Embedding gathers + positional add stay in plain JAX (glue); flatten batch.
    pos = jnp.arange(L, dtype=jnp.int32)
    embedded = (tok_emb[src] + pos_emb[pos][None, :, :]).reshape(BL, E)

    # Split conv weights/biases into GLU halves and reshape to im2col form:
    #   conv_w[l, k, i, o]  ->  W_cat[l, k*H + i, o_half]
    conv_wa = conv_w[..., :H].reshape(NL, K * H, H)
    conv_wg = conv_w[..., H:].reshape(NL, K * H, H)
    conv_ba = conv_b[..., :H]                                    # (NL, 1, H)
    conv_bg = conv_b[..., H:]                                    # (NL, 1, H)

    kernel = functools.partial(
        _encoder_kernel, n_layers=n_layers, kernel_size=kernel_size,
        batch=B, seq_len=L, hid_dim=H, emb_dim=E, use_bf16=use_bf16)

    # TODO(synk): at real ConvS2S sizes (e.g. H=512, NL=10) stream conv weights
    # per layer (layer grid axis or manual double-buffered DMA from HBM) instead
    # of keeping them all VMEM-resident, and tile B*L over a "parallel" grid
    # axis so v7x's two TensorCores each get a balanced chunk.
    out = pl.pallas_call(
        kernel,
        out_shape=jax.ShapeDtypeStruct((2, BL, E_out), jnp.float32),
        grid_spec=pltpu.PrefetchScalarGridSpec(
            num_scalar_prefetch=0,
            grid=(1,),                                            # single fused step
            in_specs=[
                pl.BlockSpec((BL, E), lambda i: (0, 0)),          # embedded (flattened)
                pl.BlockSpec((E, H), lambda i: (0, 0)),           # emb2hid W
                pl.BlockSpec((1, H), lambda i: (0, 0)),           # emb2hid b
                pl.BlockSpec((NL, K * H, H), lambda i: (0, 0, 0)),  # conv W (linear half)
                pl.BlockSpec((NL, K * H, H), lambda i: (0, 0, 0)),  # conv W (gate half)
                pl.BlockSpec((NL, 1, H), lambda i: (0, 0, 0)),    # conv b (linear half)
                pl.BlockSpec((NL, 1, H), lambda i: (0, 0, 0)),    # conv b (gate half)
                pl.BlockSpec((H, E), lambda i: (0, 0)),           # hid2emb W
                pl.BlockSpec((1, E), lambda i: (0, 0)),           # hid2emb b
            ],
            out_specs=pl.BlockSpec((2, BL, E_out), lambda i: (0, 0, 0)),
            scratch_shapes=[pltpu.VMEM((B, L + 2 * pad, H), jnp.float32)],
        ),
        compiler_params=pltpu.CompilerParams(
            dimension_semantics=("arbitrary",),
            vmem_limit_bytes=64 * 1024 * 1024),
    )(embedded, w_e2h, b_e2h, conv_wa, conv_wg, conv_ba, conv_bg, w_h2e, b_h2e)

    conved = out[0, :, :E].reshape(B, L, E)
    combined = out[1, :, :E].reshape(B, L, E)
    return conved, combined


def encoder_ref(src, params, *, n_layers, kernel_size):
    """Pure-JAX reference mirroring the PyTorch forward (dropout = identity)."""
    tok_emb, pos_emb = params["tok_emb"], params["pos_emb"]
    B, L = src.shape
    H = params["w_e2h"].shape[1]
    pad = (kernel_size - 1) // 2

    pos = jnp.arange(L, dtype=jnp.int32)
    embedded = tok_emb[src] + pos_emb[pos][None, :, :]                 # (B, L, E)
    x = embedded @ params["w_e2h"] + params["b_e2h"]                   # (B, L, H)
    x = jnp.transpose(x, (0, 2, 1))                                    # (B, H, L) == NCL
    for l in range(n_layers):
        w_oih = jnp.transpose(params["conv_w"][l], (2, 1, 0))          # (2H, H, K)
        out = lax.conv_general_dilated(
            x, w_oih, window_strides=(1,), padding=[(pad, pad)],
            dimension_numbers=("NCH", "OIH", "NCH"))
        out = out + params["conv_b"][l].reshape(1, 2 * H, 1)
        a, g = out[:, :H, :], out[:, H:, :]
        conved = a * jax.nn.sigmoid(g)
        x = (conved + x) * SCALE
    conved = jnp.transpose(x, (0, 2, 1)) @ params["w_h2e"] + params["b_h2e"]
    combined = (conved + embedded) * SCALE
    return conved, combined


def init_params(key, *, input_dim, emb_dim, hid_dim, n_layers, kernel_size, max_length):
    ks = jax.random.split(key, 8)
    p = {
        "tok_emb": jax.random.normal(ks[0], (input_dim, emb_dim), jnp.float32) * 0.1,
        "pos_emb": jax.random.normal(ks[1], (max_length, emb_dim), jnp.float32) * 0.1,
        "w_e2h": jax.random.normal(ks[2], (emb_dim, hid_dim), jnp.float32) * 0.1,
        "b_e2h": jax.random.normal(ks[3], (1, hid_dim), jnp.float32) * 0.1,
        # conv_w[l, k, i, o]  ==  torch conv weight[o, i, k] transposed for matmul form
        "conv_w": jax.random.normal(ks[4], (n_layers, kernel_size, hid_dim, 2 * hid_dim),
                                    jnp.float32) * 0.1,
        "conv_b": jax.random.normal(ks[5], (n_layers, 1, 2 * hid_dim), jnp.float32) * 0.1,
        "w_h2e": jax.random.normal(ks[6], (hid_dim, emb_dim), jnp.float32) * 0.1,
        "b_h2e": jax.random.normal(ks[7], (1, emb_dim), jnp.float32) * 0.1,
    }
    return p


if __name__ == "__main__":
    INPUT_DIM = 20       # vocab size
    EMB_DIM = 32
    HID_DIM = 32
    N_LAYERS = 2
    KERNEL_SIZE = 3
    MAX_LEN = 50
    B, L = 2, 8

    key = jax.random.PRNGKey(0)
    k_params, k_src = jax.random.split(key)
    params = init_params(k_params, input_dim=INPUT_DIM, emb_dim=EMB_DIM, hid_dim=HID_DIM,
                         n_layers=N_LAYERS, kernel_size=KERNEL_SIZE, max_length=MAX_LEN)
    src = jax.random.randint(k_src, (B, L), 0, INPUT_DIM, dtype=jnp.int32)

    conved_r, combined_r = encoder_ref(src, params, n_layers=N_LAYERS, kernel_size=KERNEL_SIZE)

    # Strict check with f32 matmuls (exact same math as the reference).
    conved_f32, combined_f32 = encoder_pallas(src, params, n_layers=N_LAYERS,
                                              kernel_size=KERNEL_SIZE, use_bf16=False)
    jax.block_until_ready((conved_f32, combined_f32))
    assert jnp.allclose(conved_f32, conved_r, atol=1e-4, rtol=1e-4)
    assert jnp.allclose(combined_f32, combined_r, atol=1e-4, rtol=1e-4)

    # Default (fast) path: bf16 MXU operands, f32 accumulation -> relaxed tolerance.
    conved, combined = encoder_pallas(src, params, n_layers=N_LAYERS,
                                      kernel_size=KERNEL_SIZE, use_bf16=True)
    jax.block_until_ready((conved, combined))
    assert jnp.allclose(conved, conved_r, atol=2e-2, rtol=2e-2)
    assert jnp.allclose(combined, combined_r, atol=2e-2, rtol=2e-2)

    print("KERNEL_OK")
</pallas_src>

<mosaic_0001>
module attributes {stable_mosaic.version = 11 : i64} {
  func.func @_encoder_kernel(%arg0: i32, %arg1: memref<16x32xf32, #tpu.memory_space<vmem>>, %arg2: memref<32x32xf32, #tpu.memory_space<vmem>>, %arg3: memref<1x32xf32, #tpu.memory_space<vmem>>, %arg4: memref<2x96x32xf32, #tpu.memory_space<vmem>>, %arg5: memref<2x96x32xf32, #tpu.memory_space<vmem>>, %arg6: memref<2x1x32xf32, #tpu.memory_space<vmem>>, %arg7: memref<2x1x32xf32, #tpu.memory_space<vmem>>, %arg8: memref<32x32xf32, #tpu.memory_space<vmem>>, %arg9: memref<1x32xf32, #tpu.memory_space<vmem>>, %arg10: memref<2x16x128xf32, #tpu.memory_space<vmem>>, %arg11: memref<2x10x32xf32, #tpu.memory_space<vmem>>) attributes {dimension_semantics = [#tpu.dimension_semantics<arbitrary>], iteration_bounds = array<i64: 1>, scalar_prefetch = 0 : i64, scratch_operands = 1 : i64, tpu.core_type = #tpu.core_type<tc>, window_params = [{pipeline_mode = #tpu.pipeline_mode<synchronous>, transform_indices = @transform_0, window_bounds = array<i64: 16, 32>}, {pipeline_mode = #tpu.pipeline_mode<synchronous>, transform_indices = @transform_1, window_bounds = array<i64: 32, 32>}, {pipeline_mode = #tpu.pipeline_mode<synchronous>, transform_indices = @transform_2, window_bounds = array<i64: 1, 32>}, {pipeline_mode = #tpu.pipeline_mode<synchronous>, transform_indices = @transform_3, window_bounds = array<i64: 2, 96, 32>}, {pipeline_mode = #tpu.pipeline_mode<synchronous>, transform_indices = @transform_4, window_bounds = array<i64: 2, 96, 32>}, {pipeline_mode = #tpu.pipeline_mode<synchronous>, transform_indices = @transform_5, window_bounds = array<i64: 2, 1, 32>}, {pipeline_mode = #tpu.pipeline_mode<synchronous>, transform_indices = @transform_6, window_bounds = array<i64: 2, 1, 32>}, {pipeline_mode = #tpu.pipeline_mode<synchronous>, transform_indices = @transform_7, window_bounds = array<i64: 32, 32>}, {pipeline_mode = #tpu.pipeline_mode<synchronous>, transform_indices = @transform_8, window_bounds = array<i64: 1, 32>}, {pipeline_mode = #tpu.pipeline_mode<synchronous>, transform_indices = @transform_9, window_bounds = array<i64: 2, 16, 128>}]} {
    %c0 = arith.constant 0 : index
    %c0_0 = arith.constant 0 : index
    %0 = vector.load %arg1[%c0, %c0_0] : memref<16x32xf32, #tpu.memory_space<vmem>>, vector<16x32xf32>
    %c0_1 = arith.constant 0 : index
    %c0_2 = arith.constant 0 : index
    %1 = vector.load %arg2[%c0_1, %c0_2] : memref<32x32xf32, #tpu.memory_space<vmem>>, vector<32x32xf32>
    %cst = arith.constant dense<0.000000e+00> : vector<16x32xf32>
    %2 = tpu.matmul %0, %1, %cst {dimension_numbers = #tpu.dot_dimension_numbers<[1], [0], [0], [1], [0, 0, 1, 1], [], []>} : vector<16x32xf32>, vector<32x32xf32>, vector<16x32xf32> -> vector<16x32xf32>
    %c0_3 = arith.constant 0 : index
    %c0_4 = arith.constant 0 : index
    %3 = vector.load %arg3[%c0_3, %c0_4] : memref<1x32xf32, #tpu.memory_space<vmem>>, vector<1x32xf32>
    %4 = vector.broadcast %3 : vector<1x32xf32> to vector<16x32xf32>
    %5 = arith.addf %2, %4 : vector<16x32xf32>
    %cst_5 = arith.constant 0.000000e+00 : f32
    %6 = vector.broadcast %cst_5 : f32 to vector<2x10x32xf32>
    %c0_6 = arith.constant 0 : index
    %c0_7 = arith.constant 0 : index
    %c0_8 = arith.constant 0 : index
    %7 = vector.load %arg11[%c0_6, %c0_7, %c0_8] : memref<2x10x32xf32, #tpu.memory_space<vmem>>, vector<2x10x32xf32>
    tpu.vector_store %arg11[%c0_6, %c0_7, %c0_8], %6 {strides = array<i32>} : memref<2x10x32xf32, #tpu.memory_space<vmem>>, vector<2x10x32xf32>,
    %8 = vector.shape_cast %5 : vector<16x32xf32> to vector<2x8x32xf32>
    %c0_9 = arith.constant 0 : index
    %c1 = arith.constant 1 : index
    %c0_10 = arith.constant 0 : index
    %9 = vector.load %arg11[%c0_9, %c1, %c0_10] : memref<2x10x32xf32, #tpu.memory_space<vmem>>, vector<2x8x32xf32>
    tpu.vector_store %arg11[%c0_9, %c1, %c0_10], %8 {strides = array<i32>} : memref<2x10x32xf32, #tpu.memory_space<vmem>>, vector<2x8x32xf32>,
    %c0_11 = arith.constant 0 : index
    %c0_12 = arith.constant 0 : index
    %c0_13 = arith.constant 0 : index
    %10 = vector.load %arg11[%c0_11, %c0_12, %c0_13] : memref<2x10x32xf32, #tpu.memory_space<vmem>>, vector<2x8x32xf32>
    %c0_14 = arith.constant 0 : index
    %c1_15 = arith.constant 1 : index
    %c0_16 = arith.constant 0 : index
    %11 = vector.load %arg11[%c0_14, %c1_15, %c0_16] : memref<2x10x32xf32, #tpu.memory_space<vmem>>, vector<2x8x32xf32>
    %c0_17 = arith.constant 0 : index
    %c2 = arith.constant 2 : index
    %c0_18 = arith.constant 0 : index
    %12 = vector.load %arg11[%c0_17, %c2, %c0_18] : memref<2x10x32xf32, #tpu.memory_space<vmem>>, vector<2x8x32xf32>
    %13 = tpu.concatenate %10, %11, %12 in 2 : vector<2x8x32xf32>, vector<2x8x32xf32>, vector<2x8x32xf32> -> vector<2x8x96xf32>
    %14 = vector.shape_cast %13 : vector<2x8x96xf32> to vector<16x96xf32>
    %c0_19 = arith.constant 0 : index
    %c0_20 = arith.constant 0 : index
    %c0_21 = arith.constant 0 : index
    %15 = vector.load %arg4[%c0_19, %c0_20, %c0_21] : memref<2x96x32xf32, #tpu.memory_space<vmem>>, vector<1x96x32xf32>
    %16 = vector.shape_cast %15 : vector<1x96x32xf32> to vector<96x32xf32>
    %cst_22 = arith.constant dense<0.000000e+00> : vector<16x32xf32>
    %17 = tpu.matmul %14, %16, %cst_22 {dimension_numbers = #tpu.dot_dimension_numbers<[1], [0], [0], [1], [0, 0, 1, 1], [], []>} : vector<16x96xf32>, vector<96x32xf32>, vector<16x32xf32> -> vector<16x32xf32>
    %c0_23 = arith.constant 0 : index
    %c0_24 = arith.constant 0 : index
    %c0_25 = arith.constant 0 : index
    %18 = vector.load %arg6[%c0_23, %c0_24, %c0_25] : memref<2x1x32xf32, #tpu.memory_space<vmem>>, vector<1x1x32xf32>
    %19 = vector.shape_cast %18 : vector<1x1x32xf32> to vector<1x32xf32>
    %20 = vector.broadcast %19 : vector<1x32xf32> to vector<16x32xf32>
    %21 = arith.addf %17, %20 : vector<16x32xf32>
    %c0_26 = arith.constant 0 : index
    %c0_27 = arith.constant 0 : index
    %c0_28 = arith.constant 0 : index
    %22 = vector.load %arg5[%c0_26, %c0_27, %c0_28] : memref<2x96x32xf32, #tpu.memory_space<vmem>>, vector<1x96x32xf32>
    %23 = vector.shape_cast %22 : vector<1x96x32xf32> to vector<96x32xf32>
    %cst_29 = arith.constant dense<0.000000e+00> : vector<16x32xf32>
    %24 = tpu.matmul %14, %23, %cst_29 {dimension_numbers = #tpu.dot_dimension_numbers<[1], [0], [0], [1], [0, 0, 1, 1], [], []>} : vector<16x96xf32>, vector<96x32xf32>, vector<16x32xf32> -> vector<16x32xf32>
    %c0_30 = arith.constant 0 : index
    %c0_31 = arith.constant 0 : index
    %c0_32 = arith.constant 0 : index
    %25 = vector.load %arg7[%c0_30, %c0_31, %c0_32] : memref<2x1x32xf32, #tpu.memory_space<vmem>>, vector<1x1x32xf32>
    %26 = vector.shape_cast %25 : vector<1x1x32xf32> to vector<1x32xf32>
    %27 = vector.broadcast %26 : vector<1x32xf32> to vector<16x32xf32>
    %28 = arith.addf %24, %27 : vector<16x32xf32>
    %29 = arith.negf %28 : vector<16x32xf32>
    %30 = math.exp %29 : vector<16x32xf32>
    %cst_33 = arith.constant 1.000000e+00 : f32
    %31 = vector.broadcast %cst_33 : f32 to vector<16x32xf32>
    %32 = arith.addf %31, %30 : vector<16x32xf32>
    %33 = arith.divf %31, %32 : vector<16x32xf32>
    %34 = arith.mulf %21, %33 : vector<16x32xf32>
    %35 = arith.addf %34, %5 : vector<16x32xf32>
    %cst_34 = arith.constant 0.707106769 : f32
    %36 = vector.broadcast %cst_34 : f32 to vector<16x32xf32>
    %37 = arith.mulf %35, %36 : vector<16x32xf32>
    %38 = vector.shape_cast %37 : vector<16x32xf32> to vector<2x8x32xf32>
    %c0_35 = arith.constant 0 : index
    %c1_36 = arith.constant 1 : index
    %c0_37 = arith.constant 0 : index
    %39 = vector.load %arg11[%c0_35, %c1_36, %c0_37] : memref<2x10x32xf32, #tpu.memory_space<vmem>>, vector<2x8x32xf32>
    tpu.vector_store %arg11[%c0_35, %c1_36, %c0_37], %38 {strides = array<i32>} : memref<2x10x32xf32, #tpu.memory_space<vmem>>, vector<2x8x32xf32>,
    %c0_38 = arith.constant 0 : index
    %c0_39 = arith.constant 0 : index
    %c0_40 = arith.constant 0 : index
    %40 = vector.load %arg11[%c0_38, %c0_39, %c0_40] : memref<2x10x32xf32, #tpu.memory_space<vmem>>, vector<2x8x32xf32>
    %c0_41 = arith.constant 0 : index
    %c1_42 = arith.constant 1 : index
    %c0_43 = arith.constant 0 : index
    %41 = vector.load %arg11[%c0_41, %c1_42, %c0_43] : memref<2x10x32xf32, #tpu.memory_space<vmem>>, vector<2x8x32xf32>
    %c0_44 = arith.constant 0 : index
    %c2_45 = arith.constant 2 : index
    %c0_46 = arith.constant 0 : index
    %42 = vector.load %arg11[%c0_44, %c2_45, %c0_46] : memref<2x10x32xf32, #tpu.memory_space<vmem>>, vector<2x8x32xf32>
    %43 = tpu.concatenate %40, %41, %42 in 2 : vector<2x8x32xf32>, vector<2x8x32xf32>, vector<2x8x32xf32> -> vector<2x8x96xf32>
    %44 = vector.shape_cast %43 : vector<2x8x96xf32> to vector<16x96xf32>
    %c1_47 = arith.constant 1 : index
    %c0_48 = arith.constant 0 : index
    %c0_49 = arith.constant 0 : index
    %45 = vector.load %arg4[%c1_47, %c0_48, %c0_49] : memref<2x96x32xf32, #tpu.memory_space<vmem>>, vector<1x96x32xf32>
    %46 = vector.shape_cast %45 : vector<1x96x32xf32> to vector<96x32xf32>
    %cst_50 = arith.constant dense<0.000000e+00> : vector<16x32xf32>
    %47 = tpu.matmul %44, %46, %cst_50 {dimension_numbers = #tpu.dot_dimension_numbers<[1], [0], [0], [1], [0, 0, 1, 1], [], []>} : vector<16x96xf32>, vector<96x32xf32>, vector<16x32xf32> -> vector<16x32xf32>
    %c1_51 = arith.constant 1 : index
    %c0_52 = arith.constant 0 : index
    %c0_53 = arith.constant 0 : index
    %48 = vector.load %arg6[%c1_51, %c0_52, %c0_53] : memref<2x1x32xf32, #tpu.memory_space<vmem>>, vector<1x1x32xf32>
    %49 = vector.shape_cast %48 : vector<1x1x32xf32> to vector<1x32xf32>
    %50 = vector.broadcast %49 : vector<1x32xf32> to vector<16x32xf32>
    %51 = arith.addf %47, %50 : vector<16x32xf32>
    %c1_54 = arith.constant 1 : index
    %c0_55 = arith.constant 0 : index
    %c0_56 = arith.constant 0 : index
    %52 = vector.load %arg5[%c1_54, %c0_55, %c0_56] : memref<2x96x32xf32, #tpu.memory_space<vmem>>, vector<1x96x32xf32>
    %53 = vector.shape_cast %52 : vector<1x96x32xf32> to vector<96x32xf32>
    %cst_57 = arith.constant dense<0.000000e+00> : vector<16x32xf32>
    %54 = tpu.matmul %44, %53, %cst_57 {dimension_numbers = #tpu.dot_dimension_numbers<[1], [0], [0], [1], [0, 0, 1, 1], [], []>} : vector<16x96xf32>, vector<96x32xf32>, vector<16x32xf32> -> vector<16x32xf32>
    %c1_58 = arith.constant 1 : index
    %c0_59 = arith.constant 0 : index
    %c0_60 = arith.constant 0 : index
    %55 = vector.load %arg7[%c1_58, %c0_59, %c0_60] : memref<2x1x32xf32, #tpu.memory_space<vmem>>, vector<1x1x32xf32>
    %56 = vector.shape_cast %55 : vector<1x1x32xf32> to vector<1x32xf32>
    %57 = vector.broadcast %56 : vector<1x32xf32> to vector<16x32xf32>
    %58 = arith.addf %54, %57 : vector<16x32xf32>
    %59 = arith.negf %58 : vector<16x32xf32>
    %60 = math.exp %59 : vector<16x32xf32>
    %cst_61 = arith.constant 1.000000e+00 : f32
    %61 = vector.broadcast %cst_61 : f32 to vector<16x32xf32>
    %62 = arith.addf %61, %60 : vector<16x32xf32>
    %63 = arith.divf %61, %62 : vector<16x32xf32>
    %64 = arith.mulf %51, %63 : vector<16x32xf32>
    %65 = arith.addf %64, %37 : vector<16x32xf32>
    %cst_62 = arith.constant 0.707106769 : f32
    %66 = vector.broadcast %cst_62 : f32 to vector<16x32xf32>
    %67 = arith.mulf %65, %66 : vector<16x32xf32>
    %c0_63 = arith.constant 0 : index
    %c0_64 = arith.constant 0 : index
    %68 = vector.load %arg8[%c0_63, %c0_64] : memref<32x32xf32, #tpu.memory_space<vmem>>, vector<32x32xf32>
    %cst_65 = arith.constant dense<0.000000e+00> : vector<16x32xf32>
    %69 = tpu.matmul %67, %68, %cst_65 {dimension_numbers = #tpu.dot_dimension_numbers<[1], [0], [0], [1], [0, 0, 1, 1], [], []>} : vector<16x32xf32>, vector<32x32xf32>, vector<16x32xf32> -> vector<16x32xf32>
    %c0_66 = arith.constant 0 : index
    %c0_67 = arith.constant 0 : index
    %70 = vector.load %arg9[%c0_66, %c0_67] : memref<1x32xf32, #tpu.memory_space<vmem>>, vector<1x32xf32>
    %71 = vector.broadcast %70 : vector<1x32xf32> to vector<16x32xf32>
    %72 = arith.addf %69, %71 : vector<16x32xf32>
    %73 = arith.addf %72, %0 : vector<16x32xf32>
    %cst_68 = arith.constant 0.707106769 : f32
    %74 = vector.broadcast %cst_68 : f32 to vector<16x32xf32>
    %75 = arith.mulf %73, %74 : vector<16x32xf32>
    %cst_69 = arith.constant 0.000000e+00 : f32
    %76 = vector.broadcast %cst_69 : f32 to vector<16x96xf32>
    %77 = tpu.concatenate %72, %76 in 1 : vector<16x32xf32>, vector<16x96xf32> -> vector<16x128xf32>
    %78 = tpu.concatenate %75, %76 in 1 : vector<16x32xf32>, vector<16x96xf32> -> vector<16x128xf32>
    %c0_70 = arith.constant 0 : index
    %c0_71 = arith.constant 0 : index
    %c0_72 = arith.constant 0 : index
    %79 = vector.load %arg10[%c0_70, %c0_71, %c0_72] : memref<2x16x128xf32, #tpu.memory_space<vmem>>, vector<1x16x128xf32>
    %80 = vector.shape_cast %79 : vector<1x16x128xf32> to vector<16x128xf32>
    %81 = vector.shape_cast %77 : vector<16x128xf32> to vector<1x16x128xf32>
    tpu.vector_store %arg10[%c0_70, %c0_71, %c0_72], %81 {strides = array<i32>} : memref<2x16x128xf32, #tpu.memory_space<vmem>>, vector<1x16x128xf32>,
    %c1_73 = arith.constant 1 : index
    %c0_74 = arith.constant 0 : index
    %c0_75 = arith.constant 0 : index
    %82 = vector.load %arg10[%c1_73, %c0_74, %c0_75] : memref<2x16x128xf32, #tpu.memory_space<vmem>>, vector<1x16x128xf32>
    %83 = vector.shape_cast %82 : vector<1x16x128xf32> to vector<16x128xf32>
    %84 = vector.shape_cast %78 : vector<16x128xf32> to vector<1x16x128xf32>
    tpu.vector_store %arg10[%c1_73, %c0_74, %c0_75], %84 {strides = array<i32>} : memref<2x16x128xf32, #tpu.memory_space<vmem>>, vector<1x16x128xf32>,
    return
  }
  func.func @transform_0(%arg0: i32) -> (i32, i32) {
    %c0_i32 = arith.constant 0 : i32
    %c0_i32_0 = arith.constant 0 : i32
    %c0_i32_1 = arith.constant 0 : i32
    return %c0_i32, %c0_i32_0 : i32, i32
  }
  func.func @transform_1(%arg0: i32) -> (i32, i32) {
    %c0_i32 = arith.constant 0 : i32
    %c0_i32_0 = arith.constant 0 : i32
    %c0_i32_1 = arith.constant 0 : i32
    return %c0_i32, %c0_i32_0 : i32, i32
  }
  func.func @transform_2(%arg0: i32) -> (i32, i32) {
    %c0_i32 = arith.constant 0 : i32
    %c0_i32_0 = arith.constant 0 : i32
    %c0_i32_1 = arith.constant 0 : i32
    return %c0_i32, %c0_i32_0 : i32, i32
  }
  func.func @transform_3(%arg0: i32) -> (i32, i32, i32) {
    %c0_i32 = arith.constant 0 : i32
    %c0_i32_0 = arith.constant 0 : i32
    %c0_i32_1 = arith.constant 0 : i32
    %c0_i32_2 = arith.constant 0 : i32
    return %c0_i32, %c0_i32_0, %c0_i32_1 : i32, i32, i32
  }
  func.func @transform_4(%arg0: i32) -> (i32, i32, i32) {
    %c0_i32 = arith.constant 0 : i32
    %c0_i32_0 = arith.constant 0 : i32
    %c0_i32_1 = arith.constant 0 : i32
    %c0_i32_2 = arith.constant 0 : i32
    return %c0_i32, %c0_i32_0, %c0_i32_1 : i32, i32, i32
  }
  func.func @transform_5(%arg0: i32) -> (i32, i32, i32) {
    %c0_i32 = arith.constant 0 : i32
    %c0_i32_0 = arith.constant 0 : i32
    %c0_i32_1 = arith.constant 0 : i32
    %c0_i32_2 = arith.constant 0 : i32
    return %c0_i32, %c0_i32_0, %c0_i32_1 : i32, i32, i32
  }
  func.func @transform_6(%arg0: i32) -> (i32, i32, i32) {
    %c0_i32 = arith.constant 0 : i32
    %c0_i32_0 = arith.constant 0 : i32
    %c0_i32_1 = arith.constant 0 : i32
    %c0_i32_2 = arith.constant 0 : i32
    return %c0_i32, %c0_i32_0, %c0_i32_1 : i32, i32, i32
  }
  func.func @transform_7(%arg0: i32) -> (i32, i32) {
    %c0_i32 = arith.constant 0 : i32
    %c0_i32_0 = arith.constant 0 : i32
    %c0_i32_1 = arith.constant 0 : i32
    return %c0_i32, %c0_i32_0 : i32, i32
  }
  func.func @transform_8(%arg0: i32) -> (i32, i32) {
    %c0_i32 = arith.constant 0 : i32
    %c0_i32_0 = arith.constant 0 : i32
    %c0_i32_1 = arith.constant 0 : i32
    return %c0_i32, %c0_i32_0 : i32, i32
  }
  func.func @transform_9(%arg0: i32) -> (i32, i32, i32) {
    %c0_i32 = arith.constant 0 : i32
    %c0_i32_0 = arith.constant 0 : i32
    %c0_i32_1 = arith.constant 0 : i32
    %c0_i32_2 = arith.constant 0 : i32
    return %c0_i32, %c0_i32_0, %c0_i32_1 : i32, i32, i32
  }
}

</mosaic_0001>

<bundles_post_ra>
// kernel: tpu_custom_call.1
= control target key start
LH: loop header
LB: loop body
LE: loop exit
PB: predicated region body
PF: predicated region fallthrough
CT: control target
= control target key end

     0   :  { %14 = vsyncpa [#allocation4], 0  ;;  %s1740_s0 = inlined_call_operand.hbm [shape: f32[16,32], index: 0, kind: input, shape index: {}]   ;;  %s1741_s1 = inlined_call_operand.hbm [shape: f32[32,32], index: 1, kind: input, shape index: {}]   ;;  %s1742_s2 = inlined_call_operand.hbm [shape: f32[1,32], index: 2, kind: input, shape index: {}]   ;;  %s1743_s3 = inlined_call_operand.hbm [shape: f32[2,96,32], index: 3, kind: input, shape index: {}]   ;;  %s1744_s4 = inlined_call_operand.hbm [shape: f32[2,96,32], index: 4, kind: input, shape index: {}]   ;;  %s1745_s5 = inlined_call_operand.hbm [shape: f32[2,1,32], index: 5, kind: input, shape index: {}]   ;;  %s1746_s6 = inlined_call_operand.hbm [shape: f32[2,1,32], index: 6, kind: input, shape index: {}]   ;;  %s1747_s7 = inlined_call_operand.hbm [shape: f32[32,32], index: 7, kind: input, shape index: {}]   ;;  %s1748_s8 = inlined_call_operand.hbm [shape: f32[1,32], index: 8, kind: input, shape index: {}]   ;;  %s1749_s9 = inlined_call_operand.hbm [shape: f32[2,16,128], index: 9, kind: output, shape index: {}]  }
   0x1   :  { %15 = vsyncpa [#allocation7], 0 }
   0x2   :  { %16 = vsyncpa [#allocation10], 0 }
   0x3   :  { %17 = vsyncpa [#allocation13], 0 }
   0x4   :  { %18 = vsyncpa [#allocation16], 0 }
   0x5   :  { %19 = vsyncpa [#allocation5], 0  ;;  %s1460_s30 = smov [#allocation6]   ;;  %s1461_s11 = smov [#allocation9]  }
   0x6   :  { %s37_s10 = sshll.u32 %s1460_s30, 4  ;;  %s59_s12 = sshll.u32 %s1461_s11, 4  ;;  %s38_s10 = int_to_ptr.vmem [resolvable:$true] %s37_s10  ;;  %s1527_s12 = int_to_ptr.vmem [resolvable:$true] %s59_s12 }
   0x7   :  { %s1228_s15 = scalar_lea.hbm %s1741_s1, 512 }
   0x8   :  { %p1229_p0 = scmp.ne.s32.totalorder %s1741_s1, %s1228_s15  ;;  %p1232_p1 = scmp.lt.u32.totalorder %s1228_s15, %s1741_s1 }
   0xa   :  { %p1234_p2 = pnand %p1232_p1, %p1229_p0 }
   0xc   :  { %1237 = shalt.err (!%p1234_p2)
}
   0xd   :  { %s1238_s20 = scalar_lea.vmem %s38_s10, 512  ;;  %p1243_p4 = scmp.lt.s32.totalorder %s38_s10, %s38_s10 }
   0xe   :  { %p1239_p3 = scmp.ne.s32.totalorder %s38_s10, %s1238_s20  ;;  %p1244_p5 = scmp.lt.s32.totalorder %s1238_s20, %s1238_s20 }
  0x10   :  { %p1245_p6 = por %p1244_p5, %p1243_p4 }
  0x12   :  { %p1246_p7 = pnand %p1245_p6, %p1239_p3 }
  0x14   :  { %1249 = shalt.err (!%p1246_p7)
}
  0x15   :  { %s1462_s21 = smov 128   ;;  %s1463_s22 = smov 8  }
  0x16   :  { %43 = dma.hbm_to_vmem [thread:$0]  %s1741_s1, 512, %s38_s10, [#allocation7], %s1462_s21, %s1462_s21, %s1463_s22  }
  0x17   :  { %s1250_s27 = scalar_lea.hbm %s1743_s3, 3072 }
  0x18   :  { %p1251_p8 = scmp.ne.s32.totalorder %s1743_s3, %s1250_s27  ;;  %p1254_p9 = scmp.lt.u32.totalorder %s1250_s27, %s1743_s3 }
  0x1a   :  { %p1256_p10 = pnand %p1254_p9, %p1251_p8 }
  0x1c   :  { %1259 = shalt.err (!%p1256_p10)
}
  0x1d   :  { %s1260_s13 = scalar_lea.vmem %s1527_s12, 3072  ;;  %p1265_p12 = scmp.lt.s32.totalorder %s1527_s12, %s1527_s12 }
  0x1e   :  { %p1261_p11 = scmp.ne.s32.totalorder %s1527_s12, %s1260_s13  ;;  %p1266_p13 = scmp.lt.s32.totalorder %s1260_s13, %s1260_s13 }
  0x20   :  { %p1267_p0 = por %p1266_p13, %p1265_p12 }
  0x22   :  { %p1268_p1 = pnand %p1267_p0, %p1261_p11 }
  0x24   :  { %1271 = shalt.err (!%p1268_p1)
}
  0x25   :  { %65 = dma.hbm_to_vmem [thread:$0]  %s1743_s3, 3072, %s1527_s12, [#allocation10], %s1462_s21, %s1462_s21, %s1463_s22  }
  0x26   :  { %s1464_s14 = smov [#allocation12]   ;;  %s1272_s18 = scalar_lea.hbm %s1745_s5, 32 }
  0x27   :  { %s83_s15 = sshll.u32 %s1464_s14, 4  ;;  %p1273_p2 = scmp.ne.s32.totalorder %s1745_s5, %s1272_s18  ;;  %s84_s15 = int_to_ptr.vmem [resolvable:$true] %s83_s15 }
  0x28   :  { %p1276_p3 = scmp.lt.u32.totalorder %s1272_s18, %s1745_s5 }
  0x2a   :  { %p1278_p4 = pnand %p1276_p3, %p1273_p2 }
  0x2c   :  { %1281 = shalt.err (!%p1278_p4)
}
  0x2d   :  { %s1282_s25 = scalar_lea.vmem %s84_s15, 32  ;;  %p1287_p6 = scmp.lt.s32.totalorder %s84_s15, %s84_s15 }
  0x2e   :  { %p1283_p5 = scmp.ne.s32.totalorder %s84_s15, %s1282_s25  ;;  %p1288_p7 = scmp.lt.s32.totalorder %s1282_s25, %s1282_s25 }
  0x30   :  { %p1289_p8 = por %p1288_p7, %p1287_p6 }
  0x32   :  { %p1290_p9 = pnand %p1289_p8, %p1283_p5 }
  0x34   :  { %1293 = shalt.err (!%p1290_p9)
}
  0x35   :  { %s1465_s3 = smov 16   ;;  %s1466_s12 = smov 1  }
  0x36   :  { %89 = dma.hbm_to_vmem [thread:$0]  %s1745_s5, 32, %s84_s15, [#allocation13], %s1465_s3, %s1465_s3, %s1466_s12  }
  0x37   :  { %s1467_s28 = smov [#allocation15]   ;;  %s1468_s30 = smov [#allocation3]  }
  0x38   :  { %s107_s29 = sshll.u32 %s1467_s28, 4  ;;  %s25_s11 = sshll.u32 %s1468_s30, 4  ;;  %s108_s29 = int_to_ptr.vmem [resolvable:$true] %s107_s29  ;;  %s26_s11 = int_to_ptr.vmem [resolvable:$true] %s25_s11 }
  0x39   :  { %s1294_s10 = scalar_lea.hbm %s1747_s7, 512 }
  0x3a   :  { %p1295_p10 = scmp.ne.s32.totalorder %s1747_s7, %s1294_s10  ;;  %p1298_p11 = scmp.lt.u32.totalorder %s1294_s10, %s1747_s7 }
  0x3c   :  { %p1300_p12 = pnand %p1298_p11, %p1295_p10 }
  0x3e   :  { %1303 = shalt.err (!%p1300_p12)
}
  0x3f   :  { %s1304_s5 = scalar_lea.vmem %s108_s29, 512  ;;  %p1309_p0 = scmp.lt.s32.totalorder %s108_s29, %s108_s29 }
  0x40   :  { %p1305_p13 = scmp.ne.s32.totalorder %s108_s29, %s1304_s5  ;;  %p1310_p1 = scmp.lt.s32.totalorder %s1304_s5, %s1304_s5 }
  0x42   :  { %p1311_p2 = por %p1310_p1, %p1309_p0 }
  0x44   :  { %p1312_p3 = pnand %p1311_p2, %p1305_p13 }
  0x46   :  { %1315 = shalt.err (!%p1312_p3)
}
  0x47   :  { %113 = dma.hbm_to_vmem [thread:$0]  %s1747_s7, 512, %s108_s29, [#allocation16], %s1462_s21, %s1462_s21, %s1463_s22  }
  0x48   :  { %s1316_s24 = scalar_lea.hbm %s1740_s0, 256 }
  0x49   :  { %p1317_p4 = scmp.ne.s32.totalorder %s1740_s0, %s1316_s24  ;;  %p1320_p5 = scmp.lt.u32.totalorder %s1316_s24, %s1740_s0 }
  0x4b   :  { %p1322_p6 = pnand %p1320_p5, %p1317_p4 }
  0x4d   :  { %1325 = shalt.err (!%p1322_p6)
}
  0x4e   :  { %s1326_s30 = scalar_lea.vmem %s26_s11, 256  ;;  %p1331_p8 = scmp.lt.s32.totalorder %s26_s11, %s26_s11 }
  0x4f   :  { %p1327_p7 = scmp.ne.s32.totalorder %s26_s11, %s1326_s30  ;;  %p1332_p9 = scmp.lt.s32.totalorder %s1326_s30, %s1326_s30 }
  0x51   :  { %p1333_p10 = por %p1332_p9, %p1331_p8 }
  0x53   :  { %p1334_p11 = pnand %p1333_p10, %p1327_p7 }
  0x55   :  { %1337 = shalt.err (!%p1334_p11)
}
  0x56   :  { %31 = dma.hbm_to_vmem [thread:$0]  %s1740_s0, 256, %s26_s11, [#allocation4], %s1462_s21, %s1462_s21, %s1463_s22  }
  0x57   :  { %s1469_s13 = smov [#allocation8]   ;;  %s1470_s10 = smov [#allocation11]  }
  0x58   :  { %s50_s1 = sshll.u32 %s1469_s13, 4  ;;  %s71_s14 = sshll.u32 %s1470_s10, 4  ;;  %s51_s1 = int_to_ptr.vmem [resolvable:$true] %s50_s1  ;;  %s72_s14 = int_to_ptr.vmem [resolvable:$true] %s71_s14 }
  0x59   :  { %s1338_s18 = scalar_lea.hbm %s1742_s2, 16 }
  0x5a   :  { %p1339_p12 = scmp.ne.s32.totalorder %s1742_s2, %s1338_s18  ;;  %p1342_p13 = scmp.lt.u32.totalorder %s1338_s18, %s1742_s2 }
  0x5c   :  { %p1344_p0 = pnand %p1342_p13, %p1339_p12 }
  0x5e   :  { %1347 = shalt.err (!%p1344_p0)
}
  0x5f   :  { %s1348_s0 = scalar_lea.vmem %s51_s1, 16  ;;  %s1352_s11 = scalar_lea.vmem %s51_s1, 32 }
  0x60   :  { %p1349_p1 = scmp.ne.s32.totalorder %s51_s1, %s1348_s0  ;;  %p1353_p2 = scmp.lt.s32.totalorder %s51_s1, %s51_s1 }
  0x61   :  { %p1354_p3 = scmp.lt.s32.totalorder %s1352_s11, %s1348_s0 }
  0x63   :  { %p1355_p4 = por %p1354_p3, %p1353_p2 }
  0x65   :  { %p1356_p5 = pnand %p1355_p4, %p1349_p1 }
  0x67   :  { %1359 = shalt.err (!%p1356_p5)
}
  0x68   :  { %53 = dma.hbm_to_vmem [thread:$0]  %s1742_s2, 16, %s51_s1, [#allocation7]  }
  0x69   :  { %s1360_s27 = scalar_lea.hbm %s1744_s4, 3072 }
  0x6a   :  { %p1361_p6 = scmp.ne.s32.totalorder %s1744_s4, %s1360_s27  ;;  %p1364_p7 = scmp.lt.u32.totalorder %s1360_s27, %s1744_s4 }
  0x6c   :  { %p1366_p8 = pnand %p1364_p7, %p1361_p6 }
  0x6e   :  { %1369 = shalt.err (!%p1366_p8)
}
  0x6f   :  { %s1370_s13 = scalar_lea.vmem %s72_s14, 3072  ;;  %p1375_p10 = scmp.lt.s32.totalorder %s72_s14, %s72_s14 }
  0x70   :  { %p1371_p9 = scmp.ne.s32.totalorder %s72_s14, %s1370_s13  ;;  %p1376_p11 = scmp.lt.s32.totalorder %s1370_s13, %s1370_s13 }
  0x72   :  { %p1377_p12 = por %p1376_p11, %p1375_p10 }
  0x74   :  { %p1378_p13 = pnand %p1377_p12, %p1371_p9 }
  0x76   :  { %1381 = shalt.err (!%p1378_p13)
}
  0x77   :  { %77 = dma.hbm_to_vmem [thread:$0]  %s1744_s4, 3072, %s72_s14, [#allocation10], %s1462_s21, %s1462_s21, %s1463_s22  }
  0x78   :  { %s1471_s10 = smov [#allocation14]   ;;  %s1472_s17 = smov [#allocation17]  }
  0x79   :  { %s95_s16 = sshll.u32 %s1471_s10, 4  ;;  %s120_s18 = sshll.u32 %s1472_s17, 4  ;;  %s96_s16 = int_to_ptr.vmem [resolvable:$true] %s95_s16  ;;  %s121_s18 = int_to_ptr.vmem [resolvable:$true] %s120_s18 }
  0x7a   :  { %s1382_s19 = scalar_lea.hbm %s1746_s6, 32 }
  0x7b   :  { %p1383_p0 = scmp.ne.s32.totalorder %s1746_s6, %s1382_s19  ;;  %p1386_p1 = scmp.lt.u32.totalorder %s1382_s19, %s1746_s6 }
  0x7d   :  { %p1388_p2 = pnand %p1386_p1, %p1383_p0 }
  0x7f   :  { %1391 = shalt.err (!%p1388_p2)
}
  0x80   :  { %s1392_s4 = scalar_lea.vmem %s96_s16, 32  ;;  %p1397_p4 = scmp.lt.s32.totalorder %s96_s16, %s96_s16 }
  0x81   :  { %p1393_p3 = scmp.ne.s32.totalorder %s96_s16, %s1392_s4  ;;  %p1398_p5 = scmp.lt.s32.totalorder %s1392_s4, %s1392_s4 }
  0x83   :  { %p1399_p6 = por %p1398_p5, %p1397_p4 }
  0x85   :  { %p1400_p7 = pnand %p1399_p6, %p1393_p3 }
  0x87   :  { %1403 = shalt.err (!%p1400_p7)
}
  0x88   :  { %101 = dma.hbm_to_vmem [thread:$0]  %s1746_s6, 32, %s96_s16, [#allocation13], %s1465_s3, %s1465_s3, %s1466_s12  }
  0x89   :  { %s1404_s27 = scalar_lea.hbm %s1748_s8, 16 }
  0x8a   :  { %p1405_p8 = scmp.ne.s32.totalorder %s1748_s8, %s1404_s27  ;;  %p1408_p9 = scmp.lt.u32.totalorder %s1404_s27, %s1748_s8 }
  0x8c   :  { %p1410_p10 = pnand %p1408_p9, %p1405_p8 }
  0x8e   :  { %1413 = shalt.err (!%p1410_p10)
}
  0x8f   :  { %s1414_s13 = scalar_lea.vmem %s121_s18, 16  ;;  %s1418_s2 = scalar_lea.vmem %s121_s18, 32 }
  0x90   :  { %p1415_p11 = scmp.ne.s32.totalorder %s121_s18, %s1414_s13  ;;  %p1419_p12 = scmp.lt.s32.totalorder %s121_s18, %s121_s18 }
  0x91   :  { %p1420_p13 = scmp.lt.s32.totalorder %s1418_s2, %s1414_s13 }
  0x93   :  { %p1421_p0 = por %p1420_p13, %p1419_p12 }
  0x95   :  { %p1422_p1 = pnand %p1421_p0, %p1415_p11 }
  0x97   :  { %1425 = shalt.err (!%p1422_p1)
}
  0x98   :  { %123 = dma.hbm_to_vmem [thread:$0]  %s1748_s8, 16, %s121_s18, [#allocation16]  }
  0x99   :  { %1448 = dma.done.wait [#allocation4], 256  }
  0x9a   :  { %1449 = vsyncadd [#allocation4], 4294967040 }
  0x9b   :  { %1450 = dma.done.wait [#allocation7], 528  }
  0x9c   :  { %1451 = vsyncadd [#allocation7], 4294966768 }
  0x9d   :  { %1452 = dma.done.wait [#allocation10], 6144  }
  0x9e   :  { %1453 = vsyncadd [#allocation10], 4294961152 }
  0x9f   :  { %1454 = dma.done.wait [#allocation13], 64  }
  0xa0   :  { %1455 = vsyncadd [#allocation13], 4294967232 }
  0xa1   :  { %1456 = dma.done.wait [#allocation16], 528  }
  0xa2   :  { %1457 = vsyncadd [#allocation16], 4294966768  ;;  %vm164_vm0 = vcmask 261120   ;;  %v153_v0 = vld [vmem:[#allocation6] sm:$0xff]  ;;  %v154_v1 = vld [vmem:[#allocation6 + $0x8] sm:$0xff]  ;;  %vm247_vm1 = vcmask 254976  }
  0xa3   :  { %v155_v2 = vld [vmem:[#allocation6 + $0x10] sm:$0xff]  ;;  %v1083_v3 = vpack.c.bf16 %v154_v1, %v153_v0  ;;  %v156_v4 = vld [vmem:[#allocation6 + $0x18] sm:$0xff]  ;;  %v1473_v8 = vmov 0.0   ;;  %v280_v9 = vld [vmem:[#allocation9] sm:$0xff]  ;;  %s1474_s8 = smov 64   ;;  %s1475_s12 = smov 32  }
  0xa4   :  { %v1663_v5 = vld [vmem:[#allocation3] sm:$0xff]  ;;  %v1087_v6 = vpack.c.bf16 %v156_v4, %v155_v2  ;;  %v1667_v7 = vld [vmem:[#allocation3 + $0x8] sm:$0xff]  ;;  %249 = vst.msk [vmem:[#allocation2 + $0x10] sm:$0xff] %vm164_vm0, %v1473_v8  ;;  %246 = vst.msk [vmem:[#allocation2] sm:$0xff] %vm164_vm0, %v1473_v8  ;;  %vm277_vm2 = vcmask 523264   ;;  %vm299_vm3 = vcmask 785408  }
  0xa5   :  { %961 = vmatprep.mubr.msk.f32.mxu0 %vm164_vm0, %v1663_v5  ;;  %1084 = vmatprep.subr.bf16.mxu0 %v1083_v3  ;;  %250 = vst.msk [vmem:[#allocation2 + $0x18] sm:$0x3] %vm247_vm1, %v1473_v8  ;;  %248 = vst.msk [vmem:[#allocation2 + $0x8] sm:$0x3] %vm247_vm1, %v1473_v8  ;;  %v281_v10 = vld [vmem:[#allocation9 + $0x8] sm:$0xff]  ;;  %v381_v11 = vld [vmem:[#allocation11] sm:$0xff] }
  0xa6   :  { %1086 = vmatpush3.bf16.msra.mxu0 %v1083_v3  ;;  %v1091_v12 = vpack.c.bf16 %v281_v10, %v280_v9  ;;  %v382_v13 = vld [vmem:[#allocation11 + $0x8] sm:$0xff]  ;;  %v282_v14 = vld [vmem:[#allocation9 + $0x10] sm:$0xff]  ;;  %v283_v15 = vld [vmem:[#allocation9 + $0x18] sm:$0xff]  ;;  %s1476_s1 = smov [#allocation18]  }
  0xa7   :  { %1088 = vmatprep.subr.bf16.mxu0 %v1087_v6  ;;  %v1115_v16 = vpack.c.bf16 %v382_v13, %v381_v11  ;;  %v1095_v17 = vpack.c.bf16 %v283_v15, %v282_v14  ;;  %v383_v18 = vld [vmem:[#allocation11 + $0x10] sm:$0xff]  ;;  %v384_v19 = vld [vmem:[#allocation11 + $0x18] sm:$0xff]  ;;  %v284_v20 = vld [vmem:[#allocation9 + $0x20] sm:$0xff]  ;;  %s847_s10 = sshll.u32 %s1476_s1, 4  ;;  %s848_s10 = int_to_ptr.vmem [resolvable:$true] %s847_s10 }
  0xa8   :  { %1092 = vmatprep.subr.bf16.mxu1 %v1091_v12  ;;  %v1119_v21 = vpack.c.bf16 %v384_v19, %v383_v18  ;;  %v285_v22 = vld [vmem:[#allocation9 + $0x28] sm:$0xff]  ;;  %v385_v23 = vld [vmem:[#allocation11 + $0x20] sm:$0xff]  ;;  %v286_v27 = vld [vmem:[#allocation9 + $0x30] sm:$0xff]  ;;  %s1426_s16 = scalar_lea.vmem %s848_s10, 512  ;;  %p1431_p3 = scmp.lt.s32.totalorder %s848_s10, %s848_s10 }
  0xa9   :  { %v386_v24 = vld [vmem:[#allocation11 + $0x28] sm:$0xff]  ;;  %1094 = vmatpush3.bf16.msra.mxu1 %v1091_v12  ;;  %v1099_v25 = vpack.c.bf16 %v285_v22, %v284_v20  ;;  %v287_v28 = vld [vmem:[#allocation9 + $0x38] sm:$0xff]  ;;  %v387_v29 = vld [vmem:[#allocation11 + $0x30] sm:$0xff]  ;;  %p1427_p2 = scmp.ne.s32.totalorder %s848_s10, %s1426_s16  ;;  %p1432_p4 = scmp.lt.s32.totalorder %s1426_s16, %s1426_s16 }
  0xaa   :  { %1090 = vmatpush3.bf16.msra.mxu0 %v1087_v6  ;;  %1096 = vmatprep.subr.bf16.mxu1 %v1095_v17  ;;  %v1123_v26 = vpack.c.bf16 %v386_v24, %v385_v23  ;;  %v388_v30 = vld [vmem:[#allocation11 + $0x38] sm:$0xff]  ;;  %v1103_v31 = vpack.c.bf16 %v287_v28, %v286_v27  ;;  %v288_v33 = vld [vmem:[#allocation9 + $0x40] sm:$0xff]  ;;  %v289_v34 = vld [vmem:[#allocation9 + $0x48] sm:$0xff] }
  0xab   :  { %1116 = vmatprep.subr.bf16.mxu0 %v1115_v16  ;;  %v1127_v32 = vpack.c.bf16 %v388_v30, %v387_v29  ;;  %v389_v35 = vld [vmem:[#allocation11 + $0x40] sm:$0xff]  ;;  %v390_v36 = vld [vmem:[#allocation11 + $0x48] sm:$0xff]  ;;  %v1107_v37 = vpack.c.bf16 %v289_v34, %v288_v33  ;;  %v863_v39 = vld [vmem:[#allocation8] ss:$0 sm:$0xff]  ;;  %p1433_p5 = por %p1432_p4, %p1431_p3 }
  0xac   :  { %v1131_v38 = vpack.c.bf16 %v390_v36, %v389_v35  ;;  %v290_v40 = vld [vmem:[#allocation9 + $0x50] sm:$0xff]  ;;  %v291_v41 = vld [vmem:[#allocation9 + $0x58] sm:$0xff]  ;;  %v522_v0 = vld [vmem:[#allocation9 + $0x60] sm:$0xff] }
  0xad   :  { %962 = vmatmul.mubr.msk.f32.vlgmr.msra.gmra.mrb[0].mxu0 %vm164_vm0, %v1667_v7  ;;  %1098 = vmatpush3.bf16.msra.mxu1 %v1095_v17  ;;  %v391_v42 = vld [vmem:[#allocation11 + $0x50] sm:$0xff]  ;;  %v1111_v43 = vpack.c.bf16 %v291_v41, %v290_v40  ;;  %v392_v44 = vld [vmem:[#allocation11 + $0x58] sm:$0xff]  ;;  %v523_v1 = vld [vmem:[#allocation9 + $0x68] sm:$0xff]  ;;  %p1434_p6 = pnand %p1433_p5, %p1427_p2 }
  0xae   :  { %1118 = vmatpush3.bf16.msra.mxu0 %v1115_v16  ;;  %1100 = vmatprep.subr.bf16.mxu1 %v1099_v25  ;;  %v1135_v46 = vpack.c.bf16 %v392_v44, %v391_v42  ;;  %v624_v2 = vld [vmem:[#allocation11 + $0x60] sm:$0xff]  ;;  %v1139_v3 = vpack.c.bf16 %v523_v1, %v522_v0  ;;  %v625_v4 = vld [vmem:[#allocation11 + $0x68] sm:$0xff]  ;;  %v524_v6 = vld [vmem:[#allocation9 + $0x70] sm:$0xff] }
  0xaf   :  { %1120 = vmatprep.subr.bf16.mxu0 %v1119_v21  ;;  %v525_v8 = vld [vmem:[#allocation9 + $0x78] sm:$0xff]  ;;  %v1163_v9 = vpack.c.bf16 %v625_v4, %v624_v2  ;;  %v626_v11 = vld [vmem:[#allocation11 + $0x70] sm:$0xff]  ;;  %v526_v13 = vld [vmem:[#allocation9 + $0x80] sm:$0xff] }
  0xb0   :  { %v1143_v10 = vpack.c.bf16 %v525_v8, %v524_v6  ;;  %v627_v12 = vld [vmem:[#allocation11 + $0x78] sm:$0xff]  ;;  %v527_v15 = vld [vmem:[#allocation9 + $0x88] sm:$0xff]  ;;  %v628_v16 = vld [vmem:[#allocation11 + $0x80] sm:$0xff] }
  0xb1   :  { %1102 = vmatpush3.bf16.msra.mxu1 %v1099_v25  ;;  %v1167_v14 = vpack.c.bf16 %v627_v12, %v626_v11  ;;  %v629_v17 = vld [vmem:[#allocation11 + $0x88] sm:$0xff]  ;;  %v1147_v18 = vpack.c.bf16 %v527_v15, %v526_v13  ;;  %v528_v20 = vld [vmem:[#allocation9 + $0x90] sm:$0xff]  ;;  %v631_v23 = vld [vmem:[#allocation11 + $0x98] sm:$0xff] }
  0xb2   :  { %1122 = vmatpush3.bf16.msra.mxu0 %v1119_v21  ;;  %1104 = vmatprep.subr.bf16.mxu1 %v1103_v31  ;;  %v1171_v19 = vpack.c.bf16 %v629_v17, %v628_v16  ;;  %v529_v21 = vld [vmem:[#allocation9 + $0x98] sm:$0xff]  ;;  %v630_v22 = vld [vmem:[#allocation11 + $0x90] sm:$0xff]  ;;  %v531_v27 = vld [vmem:[#allocation9 + $0xa8] sm:$0xff] }
  0xb3   :  { %1124 = vmatprep.subr.bf16.mxu0 %v1123_v26  ;;  %v1151_v24 = vpack.c.bf16 %v529_v21, %v528_v20  ;;  %v1175_v25 = vpack.c.bf16 %v631_v23, %v630_v22  ;;  %v632_v28 = vld [vmem:[#allocation11 + $0xa0] sm:$0xff]  ;;  %v633_v29 = vld [vmem:[#allocation11 + $0xa8] sm:$0xff]  ;;  %v739_v16 = vld [vmem:[#allocation15 + $0x10] sm:$0xff] }
  0xb4   :  { %v738_v15 = vld [vmem:[#allocation15 + $0x8] sm:$0xff]  ;;  %v877_v20 = vld [vmem:[#allocation14 + $0x1] ss:$0 sm:$0xff] }
  0xb5   :  { %1106 = vmatpush3.bf16.msra.mxu1 %v1103_v31  ;;  %v1179_v31 = vpack.c.bf16 %v633_v29, %v632_v28 }
  0xb6   :  { %1126 = vmatpush3.bf16.msra.mxu0 %v1123_v26  ;;  %1108 = vmatprep.subr.bf16.mxu1 %v1107_v37  ;;  %v530_v26 = vld [vmem:[#allocation9 + $0xa0] sm:$0xff] }
  0xb7   :  { %1128 = vmatprep.subr.bf16.mxu0 %v1127_v32  ;;  %v1155_v30 = vpack.c.bf16 %v531_v27, %v530_v26 }
  0xb9   :  { %1110 = vmatpush3.bf16.msra.mxu1 %v1107_v37 }
  0xba   :  { %1130 = vmatpush3.bf16.msra.mxu0 %v1127_v32  ;;  %1112 = vmatprep.subr.bf16.mxu1 %v1111_v43  ;;  %v869_v32 = vld [vmem:[#allocation14] ss:$0 sm:$0xff] }
  0xbb   :  { %1132 = vmatprep.subr.bf16.mxu0 %v1131_v38 }
  0xbd   :  { %1114 = vmatpush3.bf16.msra.mxu1 %v1111_v43 }
  0xbe   :  { %1134 = vmatpush3.bf16.msra.mxu0 %v1131_v38  ;;  %1140 = vmatprep.subr.bf16.mxu1 %v1139_v3 }
  0xbf   :  { %1136 = vmatprep.subr.bf16.mxu0 %v1135_v46 }
  0xc2   :  { %1138 = vmatpush3.bf16.msra.mxu0 %v1135_v46 }
  0xc3   :  { %1164 = vmatprep.subr.bf16.mxu0 %v1163_v9 }
 0x180   :  { %v963_v45 = vpop.f32.mrb[0].mxu0 }
 0x181   :  { %v1673_v47 = vadd.f32 %v963_v45, %v863_v39  ;;  %v237_v48 = vpop.f32.mrb[1].mxu0  ;;  %v866_v45 = vld [vmem:[#allocation12] ss:$0 sm:$0xff] }
 0x182   :  { %v1675_v49 = vadd.f32 %v863_v39, %v237_v48 }
 0x183   :  { %252 = vst.msk [vmem:[#allocation2 + $0x11] sm:$0xff] %vm164_vm0, %v1673_v47 }
 0x184   :  { %251 = vst.msk [vmem:[#allocation2 + $0x1] sm:$0xff] %vm164_vm0, %v1675_v49 }
 0x18a   :  { %v258_v52 = vld [vmem:[#allocation2 + $0x12] sm:$0xff] }
 0x18b   :  { %v257_v50 = vld [vmem:[#allocation2 + $0x2] sm:$0xff]  ;;  %v256_v53 = vld [vmem:[#allocation2 + $0x11] sm:$0xff] }
 0x18c   :  { %v255_v51 = vld [vmem:[#allocation2 + $0x1] sm:$0xff]  ;;  %269 = vrot.lane.b32.xlu1 %v257_v50, %s1474_s8  ;;  %v254_v60 = vld [vmem:[#allocation2 + $0x10] sm:$0xff] }
 0x18d   :  { %261 = vrot.lane.b32.xlu0 %v255_v51, %s1475_s12  ;;  %v253_v56 = vld [vmem:[#allocation2] sm:$0xff] }
 0x190   :  { %271 = vrot.lane.b32.xlu1 %v258_v52, %s1474_s8 }
 0x191   :  { %263 = vrot.lane.b32.xlu0 %v256_v53, %s1475_s12 }
 0x1fe   :  { %v270_v54 = vpop.permute.xlu1 %269 }
 0x1ff   :  { %v262_v55 = vpop.permute.xlu0 %261 }
 0x200   :  { %v275_v57 = vsel %vm164_vm0, %v253_v56, %v262_v55  ;;  %v533_v55 = vld [vmem:[#allocation9 + $0xb8] sm:$0xff]  ;;  %v634_v56 = vld [vmem:[#allocation11 + $0xb0] sm:$0xff] }
 0x201   :  { %v278_v58 = vsel %vm277_vm2, %v275_v57, %v270_v54  ;;  %v532_v54 = vld [vmem:[#allocation9 + $0xb0] sm:$0xff] }
 0x202   :  { %988 = vmatprep.mubr.msk.f32.mxu1 %vm299_vm3, %v278_v58  ;;  %1015 = vmatprep.mubr.msk.f32.mxu0 %vm299_vm3, %v278_v58  ;;  %v272_v59 = vpop.permute.xlu1 %271  ;;  %v1159_v58 = vpack.c.bf16 %v533_v55, %v532_v54 }
 0x203   :  { %v264_v61 = vpop.permute.xlu0 %263 }
 0x204   :  { %v276_v62 = vsel %vm164_vm0, %v254_v60, %v264_v61 }
 0x205   :  { %v279_v63 = vsel %vm277_vm2, %v276_v62, %v272_v59  ;;  %v635_v59 = vld [vmem:[#allocation11 + $0xb8] sm:$0xff] }
 0x206   :  { %989 = vmatmul.mubr.msk.f32.vlgmr.msra.gmra.mrb[0].mxu1 %vm299_vm3, %v279_v63  ;;  %1016 = vmatmul.mubr.msk.f32.vlgmr.msra.gmra.mrb[2].mxu0 %vm299_vm3, %v279_v63  ;;  %v1183_v61 = vpack.c.bf16 %v635_v59, %v634_v56 }
 0x207   :  { %1142 = vmatpush3.bf16.msra.mxu1 %v1139_v3  ;;  %1166 = vmatpush3.bf16.msra.mxu0 %v1163_v9 }
 0x208   :  { %1144 = vmatprep.subr.bf16.mxu1 %v1143_v10  ;;  %1168 = vmatprep.subr.bf16.mxu0 %v1167_v14 }
 0x20b   :  { %1146 = vmatpush3.bf16.msra.mxu1 %v1143_v10  ;;  %1170 = vmatpush3.bf16.msra.mxu0 %v1167_v14  ;;  %v737_v14 = vld [vmem:[#allocation15] sm:$0xff] }
 0x20c   :  { %1148 = vmatprep.subr.bf16.mxu1 %v1147_v18  ;;  %1172 = vmatprep.subr.bf16.mxu0 %v1171_v19  ;;  %v1187_v17 = vpack.c.bf16 %v738_v15, %v737_v14 }
 0x20f   :  { %1150 = vmatpush3.bf16.msra.mxu1 %v1147_v18  ;;  %1174 = vmatpush3.bf16.msra.mxu0 %v1171_v19  ;;  %v740_v18 = vld [vmem:[#allocation15 + $0x18] sm:$0xff] }
 0x210   :  { %1152 = vmatprep.subr.bf16.mxu1 %v1151_v24  ;;  %1176 = vmatprep.subr.bf16.mxu0 %v1175_v25  ;;  %v1191_v19 = vpack.c.bf16 %v740_v18, %v739_v16 }
 0x213   :  { %1154 = vmatpush3.bf16.msra.mxu1 %v1151_v24  ;;  %1178 = vmatpush3.bf16.msra.mxu0 %v1175_v25 }
 0x214   :  { %1156 = vmatprep.subr.bf16.mxu1 %v1155_v30  ;;  %1180 = vmatprep.subr.bf16.mxu0 %v1179_v31 }
 0x217   :  { %1158 = vmatpush3.bf16.msra.mxu1 %v1155_v30  ;;  %1182 = vmatpush3.bf16.msra.mxu0 %v1179_v31 }
 0x218   :  { %1160 = vmatprep.subr.bf16.mxu1 %v1159_v58  ;;  %1184 = vmatprep.subr.bf16.mxu0 %v1183_v61 }
 0x21b   :  { %1162 = vmatpush3.bf16.msra.mxu1 %v1159_v58  ;;  %1186 = vmatpush3.bf16.msra.mxu0 %v1183_v61 }
 0x21c   :  { %1188 = vmatprep.subr.bf16.mxu1 %v1187_v17 }
 0x2d9   :  { %v990_v33 = vpop.f32.mrb[0].mxu1  ;;  %v1017_v34 = vpop.f32.mrb[2].mxu0 }
 0x2da   :  { %v472_v35 = vadd.f32 %v1017_v34, %v869_v32  ;;  %v372_v36 = vpop.f32.mrb[1].mxu1  ;;  %v466_v37 = vpop.f32.mrb[3].mxu0  ;;  %v378_v46 = vadd.f32 %v990_v33, %v866_v45  ;;  %v874_v33 = vld [vmem:[#allocation12 + $0x1] ss:$0 sm:$0xff] }
 0x2db   :  { %v467_v38 = vadd.f32 %v869_v32, %v466_v37  ;;  %v373_v50 = vadd.f32 %v866_v45, %v372_v36 }
 0x2dc   :  { %v873_v39 = vmul.f32 -1.442695, %v472_v35 }
 0x2dd   :  { %v872_v40 = vmul.f32 -1.442695, %v467_v38 }
 0x2de   :  { %1212 = vpow2.f32 %v873_v39 }
 0x2df   :  { %1214 = vpow2.f32 %v872_v40 }
 0x2e8   :  { %v1213_v41 = vpop.eup %1212 }
 0x2e9   :  { %v1215_v42 = vpop.eup %1214  ;;  %v482_v43 = vadd.f32 1.0, %v1213_v41 }
 0x2ea   :  { %v481_v44 = vadd.f32 1.0, %v1215_v42 }
 0x2eb   :  { %1216 = vrcp.f32 %v482_v43 }
 0x2ec   :  { %1218 = vrcp.f32 %v481_v44  ;;  %v882_v44 = vld [vmem:[#allocation17] ss:$0 sm:$0xff] }
 0x2f5   :  { %v1217_v48 = vpop.eup %1216 }
 0x2f6   :  { %v1219_v51 = vpop.eup %1218  ;;  %v488_v52 = vmul.f32 %v1217_v48, %v378_v46 }
 0x2f7   :  { %v487_v53 = vmul.f32 %v1219_v51, %v373_v50 }
 0x2f8   :  { %v490_v57 = vadd.f32 %v488_v52, %v1673_v47 }
 0x2f9   :  { %v489_v60 = vadd.f32 %v487_v53, %v1675_v49 }
 0x2fa   :  { %v1695_v62 = vmul.f32 0.70710677, %v490_v57 }
 0x2fb   :  { %v1697_v63 = vmul.f32 0.70710677, %v489_v60 }
 0x2fc   :  { %494 = vst.msk [vmem:[#allocation2 + $0x11] sm:$0xff] %vm164_vm0, %v1695_v62 }
 0x2fd   :  { %493 = vst.msk [vmem:[#allocation2 + $0x1] sm:$0xff] %vm164_vm0, %v1697_v63 }
 0x303   :  { %v498_v47 = vld [vmem:[#allocation2 + $0x11] sm:$0xff] }
 0x304   :  { %505 = vrot.lane.b32.xlu1 %v498_v47, %s1475_s12  ;;  %v497_v0 = vld [vmem:[#allocation2 + $0x1] sm:$0xff]  ;;  %v500_v49 = vld [vmem:[#allocation2 + $0x12] sm:$0xff] }
 0x305   :  { %503 = vrot.lane.b32.xlu0 %v497_v0, %s1475_s12  ;;  %v499_v1 = vld [vmem:[#allocation2 + $0x2] sm:$0xff]  ;;  %v496_v8 = vld [vmem:[#allocation2 + $0x10] sm:$0xff] }
 0x306   :  { %v495_v4 = vld [vmem:[#allocation2] sm:$0xff] }
 0x308   :  { %513 = vrot.lane.b32.xlu1 %v500_v49, %s1474_s8 }
 0x309   :  { %511 = vrot.lane.b32.xlu0 %v499_v1, %s1474_s8 }
 0x376   :  { %v506_v2 = vpop.permute.xlu1 %505 }
 0x377   :  { %v504_v3 = vpop.permute.xlu0 %503  ;;  %v518_v11 = vsel %vm164_vm0, %v496_v8, %v506_v2 }
 0x378   :  { %v517_v9 = vsel %vm164_vm0, %v495_v4, %v504_v3 }
 0x37a   :  { %v514_v6 = vpop.permute.xlu1 %513 }
 0x37b   :  { %v512_v10 = vpop.permute.xlu0 %511  ;;  %v520_v13 = vsel %vm277_vm2, %v518_v11, %v514_v6 }
 0x37c   :  { %v519_v12 = vsel %vm277_vm2, %v517_v9, %v512_v10 }
 0x37d   :  { %1042 = vmatprep.mubr.msk.f32.mxu1 %vm299_vm3, %v519_v12  ;;  %1069 = vmatprep.mubr.msk.f32.mxu0 %vm299_vm3, %v519_v12 }
 0x37e   :  { %1043 = vmatmul.mubr.msk.f32.vlgmr.msra.gmra.mrb[2].mxu1 %vm299_vm3, %v520_v13  ;;  %1070 = vmatmul.mubr.msk.f32.vlgmr.msra.gmra.mrb[4].mxu0 %vm299_vm3, %v520_v13 }
 0x37f   :  { %1190 = vmatpush3.bf16.msra.mxu1 %v1187_v17 }
 0x380   :  { %1192 = vmatprep.subr.bf16.mxu1 %v1191_v19 }
 0x383   :  { %1194 = vmatpush3.bf16.msra.mxu1 %v1191_v19 }
 0x451   :  { %v1044_v21 = vpop.f32.mrb[2].mxu1  ;;  %v1071_v22 = vpop.f32.mrb[4].mxu0 }
 0x452   :  { %v716_v23 = vadd.f32 %v1071_v22, %v877_v20  ;;  %v614_v24 = vpop.f32.mrb[3].mxu1  ;;  %v710_v25 = vpop.f32.mrb[5].mxu0  ;;  %v620_v34 = vadd.f32 %v1044_v21, %v874_v33 }
 0x453   :  { %v711_v26 = vadd.f32 %v877_v20, %v710_v25  ;;  %v615_v36 = vadd.f32 %v874_v33, %v614_v24 }
 0x454   :  { %v881_v27 = vmul.f32 -1.442695, %v716_v23 }
 0x455   :  { %v880_v28 = vmul.f32 -1.442695, %v711_v26 }
 0x456   :  { %1220 = vpow2.f32 %v881_v27 }
 0x457   :  { %1222 = vpow2.f32 %v880_v28 }
 0x460   :  { %v1221_v29 = vpop.eup %1220 }
 0x461   :  { %v1223_v30 = vpop.eup %1222  ;;  %v726_v31 = vadd.f32 1.0, %v1221_v29 }
 0x462   :  { %v725_v32 = vadd.f32 1.0, %v1223_v30 }
 0x463   :  { %1224 = vrcp.f32 %v726_v31 }
 0x464   :  { %1226 = vrcp.f32 %v725_v32 }
 0x46d   :  { %v1225_v35 = vpop.eup %1224 }
 0x46e   :  { %v1227_v37 = vpop.eup %1226  ;;  %v732_v38 = vmul.f32 %v1225_v35, %v620_v34 }
 0x46f   :  { %v731_v39 = vmul.f32 %v1227_v37, %v615_v36 }
 0x470   :  { %v734_v40 = vadd.f32 %v732_v38, %v1695_v62 }
 0x471   :  { %v733_v41 = vadd.f32 %v731_v39, %v1697_v63 }
 0x472   :  { %v736_v43 = vmul.f32 0.70710677, %v734_v40 }
 0x473   :  { %v735_v42 = vmul.f32 0.70710677, %v733_v41 }
 0x475   :  { %1080 = vmatprep.mubr.msk.f32.mxu1 %vm164_vm0, %v735_v42 }
 0x476   :  { %1081 = vmatmul.mubr.msk.f32.vlgmr.msra.gmra.mrb[4].mxu1 %vm164_vm0, %v736_v43 }
 0x549   :  { %v1082_v45 = vpop.f32.mrb[4].mxu1 }
 0x54a   :  { %v826_v46 = vadd.f32 %v1082_v45, %v882_v44  ;;  %v820_v48 = vpop.f32.mrb[5].mxu1 }
 0x54b   :  { %v821_v50 = vadd.f32 %v882_v44, %v820_v48 }
 0x54c   :  { %v830_v51 = vadd.f32 %v826_v46, %v1667_v7  ;;  %v834_v52 = vsel %vm164_vm0, %v826_v46, 0.0 }
 0x54d   :  { %838 = vst [vmem:[#allocation18 + $0x8] sm:$0xff] %v834_v52  ;;  %v829_v53 = vadd.f32 %v821_v50, %v1663_v5  ;;  %v833_v54 = vsel %vm164_vm0, %v821_v50, 0.0 }
 0x54e   :  { %v832_v55 = vmul.f32 0.70710677, %v830_v51  ;;  %837 = vst [vmem:[#allocation18] sm:$0xff] %v833_v54 }
 0x54f   :  { %v831_v56 = vmul.f32 0.70710677, %v829_v53 }
 0x550   :  { %v836_v57 = vsel %vm164_vm0, %v832_v55, 0.0 }
 0x551   :  { %841 = vst [vmem:[#allocation18 + $0x18] sm:$0xff] %v836_v57  ;;  %v835_v58 = vsel %vm164_vm0, %v831_v56, 0.0 }
 0x552   :  { %840 = vst [vmem:[#allocation18 + $0x10] sm:$0xff] %v835_v58 }
 0x553   :  { %1437 = shalt.err (!%p1434_p6)
}
 0x554   :  { %s1438_s5 = scalar_lea.hbm %s1749_s9, 512 }
 0x555   :  { %p1439_p7 = scmp.ne.s32.totalorder %s1749_s9, %s1438_s5  ;;  %p1442_p8 = scmp.lt.u32.totalorder %s1438_s5, %s1749_s9 }
 0x557   :  { %p1444_p9 = pnand %p1442_p8, %p1439_p7 }
 0x559   :  { %1447 = shalt.err (!%p1444_p9)
}
 0x55a   :  { %853 = dma.vmem_to_hbm [thread:$0]  %s848_s10, 512, %s1749_s9, [#allocation5], %s1462_s21, %s1462_s21, %s1463_s22  }
 0x55b   :  { %1458 = dma.done.wait [#allocation5], 512  }
 0x55c   :  { %1459 = vsyncadd [#allocation5], 4294966784 }
 0x55d   :  { %857 = vsyncpa [#allocation4], 1 }
 0x55e   :  { %858 = vsyncpa [#allocation7], 1 }
 0x55f   :  { %859 = vsyncpa [#allocation10], 1 }
 0x560   :  { %860 = vsyncpa [#allocation13], 1 }
 0x561   :  { %861 = vsyncpa [#allocation16], 1 }
 0x562   :  { %862 = vsyncpa [#allocation5], 1 }

</bundles_post_ra>
